<compile_context>
chip_gen: v7x
topology: tpu7x:2x2x1
jax: 0.10.0
libtpu: 0.0.40
codegen_flags: <defaults>
</compile_context>

<pallas_src>
import functools
import itertools
import math

import numpy as np
import jax
import jax.numpy as jnp
from jax.experimental import pallas as pl
from jax.experimental.pallas import tpu as pltpu


# ----------------------------------------------------------------------------
# Host-side (static) helper: same as torch make_monomial_power, but numpy.
# ----------------------------------------------------------------------------
def make_monomial_power(dim: int, degree: int) -> np.ndarray:
    assert 0 <= dim and 0 <= degree
    ret = np.zeros((math.comb(degree + dim, dim), dim), dtype=np.int32)
    i = 0
    for deg in range(degree + 1):
        for comb in itertools.combinations_with_replacement(range(dim), deg):
            for j in comb:
                ret[i, j] += 1
            i += 1
    return ret


def _round_up(x: int, m: int) -> int:
    return ((x + m - 1) // m) * m


# ----------------------------------------------------------------------------
# Pallas kernel (transposed layout: channels on sublanes, queries on lanes).
# Grid = (query tiles, N tiles).  The N axis is a reduction ("arbitrary"):
# a (C_pad, tq) f32 accumulator lives in scratch, is seeded with the
# polynomial term at k == 0 and written out at the last k.
# ----------------------------------------------------------------------------
def _rbf_query_kernel(poly_power, ptsT_ref, psq_ref, daug_ref, wT_ref, cT_ref,
                      out_ref, acc_ref):
    k = pl.program_id(1)

    ptsT = ptsT_ref[...]                              # (D, tq)  f32
    D = ptsT.shape[0]

    @pl.when(k == 0)
    def _():
        # Polynomial part (transposed): acc[ch, q] = sum_p cT[ch, p] * t_p[q].
        # P is tiny; fully unrolled VPU work.
        acc = jnp.zeros_like(acc_ref)
        for p in range(poly_power.shape[0]):
            t = jnp.ones((1, ptsT.shape[1]), jnp.float32)
            for d in range(poly_power.shape[1]):
                for _ in range(int(poly_power[p, d])):
                    t = t * ptsT[d:d + 1, :]
            acc = acc + cT_ref[:, p:p + 1] * t        # (C_pad,1)*(1,tq)
        acc_ref[...] = acc

    # daug = [-2 * data_pos | ||data_pos||^2]  -> (tn, D + 1)
    daug = daug_ref[...]
    psq = psq_ref[...]                                # (1, tq)

    # ---- squared distances on the VPU (no MXU, D unrolled) ----
    s = daug[:, D:D + 1] + psq                        # (tn,1)+(1,tq) -> (tn,tq)
    for d in range(D):
        s = s + daug[:, d:d + 1] * ptsT[d:d + 1, :]
    s = jnp.maximum(s, 0.0)                           # clamp fp cancellation
    phi = s * jnp.sqrt(s)                             # phi(r) = r**3

    # ---- single MXU matmul: (C_pad, tn) @ (tn, tq) -> (C_pad, tq) ----
    acc_ref[...] += jnp.dot(wT_ref[...], phi, preferred_element_type=jnp.float32)

    @pl.when(k == pl.num_programs(1) - 1)
    def _():
        out_ref[...] = acc_ref[...].astype(out_ref.dtype)


# ----------------------------------------------------------------------------
# Wrapper: flatten arbitrary leading dims, pad Q / N (lanes, 128) and
# C (sublanes, 8), tile queries (parallel) and data points (reduction).
# ----------------------------------------------------------------------------
def rbf_query(point_pos, data_pos, w, c, poly_power, *, tq=512, tn=1024):
    batch_shape = point_pos.shape[:-1]
    D = point_pos.shape[-1]
    N, C = w.shape
    P = c.shape[0]

    f32 = jnp.float32
    pts_flat = point_pos.reshape(-1, D).astype(f32)
    Q = pts_flat.shape[0]

    # Both tq (queries) and tn (data points) are lane dims somewhere -> 128
    # multiples; defaults are 256-aligned for the 256-wide v6e/v7x MXU.
    q_ru = _round_up(Q, 128)
    n_ru = _round_up(N, 128)
    tq = max(128, min(_round_up(tq, 128), q_ru))
    tn = max(128, min(_round_up(tn, 128), n_ru))
    # Prefer >= 2 query tiles (v7x has 2 TensorCores on the "parallel" axis).
    if q_ru // tq < 2 and q_ru >= 256:
        tq = _round_up((q_ru + 1) // 2, 128)

    Q_pad = _round_up(Q, tq)
    N_pad = _round_up(N, tn)
    C_pad = _round_up(C, 8)          # channels live on sublanes now

    # Query-side inputs (per call).
    ptsT = jnp.zeros((D, Q_pad), f32).at[:, :Q].set(pts_flat.T)   # (D, Q_pad)
    psq = jnp.sum(ptsT * ptsT, axis=0, keepdims=True)             # (1, Q_pad)

    # Static interpolator parameters (could be cached across calls).
    data_f32 = data_pos.astype(f32)
    daug = jnp.zeros((N_pad, D + 1), f32)
    daug = daug.at[:N, :D].set(-2.0 * data_f32)
    daug = daug.at[:N, D].set(jnp.sum(data_f32 * data_f32, axis=-1))
    wT = jnp.zeros((C_pad, N_pad), f32).at[:C, :N].set(w.astype(f32).T)
    cT = jnp.zeros((C_pad, P), f32).at[:C, :].set(c.astype(f32).T)

    kern = functools.partial(_rbf_query_kernel, np.asarray(poly_power))

    out_t = pl.pallas_call(
        kern,
        out_shape=jax.ShapeDtypeStruct((C_pad, Q_pad), f32),
        grid_spec=pltpu.PrefetchScalarGridSpec(
            num_scalar_prefetch=0,
            grid=(Q_pad // tq, N_pad // tn),
            in_specs=[
                pl.BlockSpec((D, tq), lambda i, k: (0, i)),        # ptsT
                pl.BlockSpec((1, tq), lambda i, k: (0, i)),        # ||p||^2
                pl.BlockSpec((tn, D + 1), lambda i, k: (k, 0)),    # [-2d | d^2]
                pl.BlockSpec((C_pad, tn), lambda i, k: (0, k)),    # w^T
                pl.BlockSpec((C_pad, P), lambda i, k: (0, 0)),     # c^T (resident)
            ],
            out_specs=pl.BlockSpec((C_pad, tq), lambda i, k: (0, i)),
            scratch_shapes=[pltpu.VMEM((C_pad, tq), jnp.float32)],
        ),
        compiler_params=pltpu.CompilerParams(
            dimension_semantics=("parallel", "arbitrary"),
            vmem_limit_bytes=40 * 1024 * 1024),
    )(ptsT, psq, daug, wT, cT)

    out = out_t[:C, :Q].T.astype(point_pos.dtype)
    return out.reshape(*batch_shape, C)


# ----------------------------------------------------------------------------
# Pure-JAX reference (direct pairwise differences, no Pallas).
# ----------------------------------------------------------------------------
def rbf_query_ref(point_pos, data_pos, w, c, poly_power):
    diff = point_pos[..., None, :] - data_pos[None, :, :]
    r = jnp.sqrt(jnp.sum(diff * diff, axis=-1))
    phi = r ** 3
    w_val = jnp.einsum('nc,...n->...c', w, phi)

    terms = []
    for row in np.asarray(poly_power):
        t = jnp.ones(point_pos.shape[:-1], dtype=point_pos.dtype)
        for d, p in enumerate(row):
            for _ in range(int(p)):
                t = t * point_pos[..., d]
        terms.append(t)
    poly = jnp.stack(terms, axis=-1)
    c_val = jnp.einsum('pc,...p->...c', c, poly)
    return w_val + c_val


if __name__ == "__main__":
    # Small deterministic problem consistent with the module's __init__ shapes:
    #   data_pos: (N, D), w: (N, C), c: (P, C), poly_power: (P, D)
    #   point_pos: (..., D)  ->  output: (..., C)
    N, D, C, DEG = 16, 3, 4, 1
    poly_power = make_monomial_power(D, DEG)      # (P, D), P = comb(D+DEG, D) = 4
    P = poly_power.shape[0]

    key = jax.random.PRNGKey(0)
    k1, k2, k3, k4 = jax.random.split(key, 4)
    data_pos = jax.random.normal(k1, (N, D), dtype=jnp.float32)
    w = jax.random.normal(k2, (N, C), dtype=jnp.float32)
    c = jax.random.normal(k3, (P, C), dtype=jnp.float32)
    # Query count deliberately NOT a multiple of the tile to exercise padding
    # (and the >=2-query-tile split).
    point_pos = jax.random.normal(k4, (2, 67, D), dtype=jnp.float32)

    out = rbf_query(point_pos, data_pos, w, c, poly_power)
    out = jax.block_until_ready(out)

    ref = jax.block_until_ready(
        rbf_query_ref(point_pos, data_pos, w, c, poly_power))

    np.testing.assert_allclose(np.asarray(out), np.asarray(ref),
                               rtol=2e-3, atol=2e-3)
    assert out.shape == (2, 67, C)
    print("KERNEL_OK")
</pallas_src>

<mosaic_0001>
module attributes {stable_mosaic.version = 11 : i64} {
  func.func @_rbf_query_kernel(%arg0: i32, %arg1: i32, %arg2: memref<3x128xf32, #tpu.memory_space<vmem>>, %arg3: memref<1x128xf32, #tpu.memory_space<vmem>>, %arg4: memref<128x4xf32, #tpu.memory_space<vmem>>, %arg5: memref<8x128xf32, #tpu.memory_space<vmem>>, %arg6: memref<8x4xf32, #tpu.memory_space<vmem>>, %arg7: memref<8x128xf32, #tpu.memory_space<vmem>>, %arg8: memref<8x128xf32, #tpu.memory_space<vmem>>) attributes {dimension_semantics = [#tpu.dimension_semantics<parallel>, #tpu.dimension_semantics<arbitrary>], iteration_bounds = array<i64: 2, 1>, scalar_prefetch = 0 : i64, scratch_operands = 1 : i64, tpu.core_type = #tpu.core_type<tc>, window_params = [{transform_indices = @transform_0, window_bounds = array<i64: 3, 128>}, {transform_indices = @transform_1, window_bounds = array<i64: 1, 128>}, {transform_indices = @transform_2, window_bounds = array<i64: 128, 4>}, {transform_indices = @transform_3, window_bounds = array<i64: 8, 128>}, {pipeline_mode = #tpu.pipeline_mode<synchronous>, transform_indices = @transform_4, window_bounds = array<i64: 8, 4>}, {transform_indices = @transform_5, window_bounds = array<i64: 8, 128>}]} {
    %c0 = arith.constant 0 : index
    %c0_0 = arith.constant 0 : index
    %0 = vector.load %arg2[%c0, %c0_0] : memref<3x128xf32, #tpu.memory_space<vmem>>, vector<3x128xf32>
    %c0_i32 = arith.constant 0 : i32
    %1 = arith.cmpi eq, %arg1, %c0_i32 : i32
    %2 = arith.extui %1 : i1 to i32
    %c0_i32_1 = arith.constant 0 : i32
    %3 = arith.cmpi ne, %2, %c0_i32_1 : i32
    scf.if %3 {
      %cst_15 = arith.constant 0.000000e+00 : f32
      %40 = vector.broadcast %cst_15 : f32 to vector<8x128xf32>
      %cst_16 = arith.constant 1.000000e+00 : f32
      %41 = vector.broadcast %cst_16 : f32 to vector<1x128xf32>
      %c0_17 = arith.constant 0 : index
      %c0_18 = arith.constant 0 : index
      %42 = vector.load %arg6[%c0_17, %c0_18] : memref<8x4xf32, #tpu.memory_space<vmem>>, vector<8x1xf32>
      %43 = vector.broadcast %42 : vector<8x1xf32> to vector<8x128xf32>
      %44 = vector.broadcast %41 : vector<1x128xf32> to vector<8x128xf32>
      %45 = arith.mulf %43, %44 : vector<8x128xf32>
      %46 = arith.addf %40, %45 : vector<8x128xf32>
      %cst_19 = arith.constant 1.000000e+00 : f32
      %47 = vector.broadcast %cst_19 : f32 to vector<1x128xf32>
      %48 = vector.extract_strided_slice %0 {offsets = [0, 0], sizes = [1, 128], strides = [1, 1]} : vector<3x128xf32> to vector<1x128xf32>
      %49 = arith.mulf %47, %48 : vector<1x128xf32>
      %c0_20 = arith.constant 0 : index
      %c1 = arith.constant 1 : index
      %50 = vector.load %arg6[%c0_20, %c1] : memref<8x4xf32, #tpu.memory_space<vmem>>, vector<8x1xf32>
      %51 = vector.broadcast %50 : vector<8x1xf32> to vector<8x128xf32>
      %52 = vector.broadcast %49 : vector<1x128xf32> to vector<8x128xf32>
      %53 = arith.mulf %51, %52 : vector<8x128xf32>
      %54 = arith.addf %46, %53 : vector<8x128xf32>
      %cst_21 = arith.constant 1.000000e+00 : f32
      %55 = vector.broadcast %cst_21 : f32 to vector<1x128xf32>
      %56 = vector.extract_strided_slice %0 {offsets = [1, 0], sizes = [1, 128], strides = [1, 1]} : vector<3x128xf32> to vector<1x128xf32>
      %57 = arith.mulf %55, %56 : vector<1x128xf32>
      %c0_22 = arith.constant 0 : index
      %c2 = arith.constant 2 : index
      %58 = vector.load %arg6[%c0_22, %c2] : memref<8x4xf32, #tpu.memory_space<vmem>>, vector<8x1xf32>
      %59 = vector.broadcast %58 : vector<8x1xf32> to vector<8x128xf32>
      %60 = vector.broadcast %57 : vector<1x128xf32> to vector<8x128xf32>
      %61 = arith.mulf %59, %60 : vector<8x128xf32>
      %62 = arith.addf %54, %61 : vector<8x128xf32>
      %cst_23 = arith.constant 1.000000e+00 : f32
      %63 = vector.broadcast %cst_23 : f32 to vector<1x128xf32>
      %64 = vector.extract_strided_slice %0 {offsets = [2, 0], sizes = [1, 128], strides = [1, 1]} : vector<3x128xf32> to vector<1x128xf32>
      %65 = arith.mulf %63, %64 : vector<1x128xf32>
      %c0_24 = arith.constant 0 : index
      %c3 = arith.constant 3 : index
      %66 = vector.load %arg6[%c0_24, %c3] : memref<8x4xf32, #tpu.memory_space<vmem>>, vector<8x1xf32>
      %67 = vector.broadcast %66 : vector<8x1xf32> to vector<8x128xf32>
      %68 = vector.broadcast %65 : vector<1x128xf32> to vector<8x128xf32>
      %69 = arith.mulf %67, %68 : vector<8x128xf32>
      %70 = arith.addf %62, %69 : vector<8x128xf32>
      %c0_25 = arith.constant 0 : index
      %c0_26 = arith.constant 0 : index
      %71 = vector.load %arg8[%c0_25, %c0_26] : memref<8x128xf32, #tpu.memory_space<vmem>>, vector<8x128xf32>
      tpu.vector_store %arg8[%c0_25, %c0_26], %70 {strides = array<i32>} : memref<8x128xf32, #tpu.memory_space<vmem>>, vector<8x128xf32>,
    } else {
    }
    %c0_2 = arith.constant 0 : index
    %c0_3 = arith.constant 0 : index
    %4 = vector.load %arg4[%c0_2, %c0_3] : memref<128x4xf32, #tpu.memory_space<vmem>>, vector<128x4xf32>
    %c0_4 = arith.constant 0 : index
    %c0_5 = arith.constant 0 : index
    %5 = vector.load %arg3[%c0_4, %c0_5] : memref<1x128xf32, #tpu.memory_space<vmem>>, vector<1x128xf32>
    %6 = vector.extract_strided_slice %4 {offsets = [0, 3], sizes = [128, 1], strides = [1, 1]} : vector<128x4xf32> to vector<128x1xf32>
    %7 = vector.broadcast %6 : vector<128x1xf32> to vector<128x128xf32>
    %8 = vector.broadcast %5 : vector<1x128xf32> to vector<128x128xf32>
    %9 = arith.addf %7, %8 : vector<128x128xf32>
    %10 = vector.extract_strided_slice %4 {offsets = [0, 0], sizes = [128, 1], strides = [1, 1]} : vector<128x4xf32> to vector<128x1xf32>
    %11 = vector.extract_strided_slice %0 {offsets = [0, 0], sizes = [1, 128], strides = [1, 1]} : vector<3x128xf32> to vector<1x128xf32>
    %12 = vector.broadcast %10 : vector<128x1xf32> to vector<128x128xf32>
    %13 = vector.broadcast %11 : vector<1x128xf32> to vector<128x128xf32>
    %14 = arith.mulf %12, %13 : vector<128x128xf32>
    %15 = arith.addf %9, %14 : vector<128x128xf32>
    %16 = vector.extract_strided_slice %4 {offsets = [0, 1], sizes = [128, 1], strides = [1, 1]} : vector<128x4xf32> to vector<128x1xf32>
    %17 = vector.extract_strided_slice %0 {offsets = [1, 0], sizes = [1, 128], strides = [1, 1]} : vector<3x128xf32> to vector<1x128xf32>
    %18 = vector.broadcast %16 : vector<128x1xf32> to vector<128x128xf32>
    %19 = vector.broadcast %17 : vector<1x128xf32> to vector<128x128xf32>
    %20 = arith.mulf %18, %19 : vector<128x128xf32>
    %21 = arith.addf %15, %20 : vector<128x128xf32>
    %22 = vector.extract_strided_slice %4 {offsets = [0, 2], sizes = [128, 1], strides = [1, 1]} : vector<128x4xf32> to vector<128x1xf32>
    %23 = vector.extract_strided_slice %0 {offsets = [2, 0], sizes = [1, 128], strides = [1, 1]} : vector<3x128xf32> to vector<1x128xf32>
    %24 = vector.broadcast %22 : vector<128x1xf32> to vector<128x128xf32>
    %25 = vector.broadcast %23 : vector<1x128xf32> to vector<128x128xf32>
    %26 = arith.mulf %24, %25 : vector<128x128xf32>
    %27 = arith.addf %21, %26 : vector<128x128xf32>
    %cst = arith.constant 0.000000e+00 : f32
    %28 = vector.broadcast %cst : f32 to vector<128x128xf32>
    %29 = arith.maximumf %27, %28 : vector<128x128xf32>
    %30 = math.sqrt %29 : vector<128x128xf32>
    %31 = arith.mulf %29, %30 : vector<128x128xf32>
    %c0_6 = arith.constant 0 : index
    %c0_7 = arith.constant 0 : index
    %32 = vector.load %arg8[%c0_6, %c0_7] : memref<8x128xf32, #tpu.memory_space<vmem>>, vector<8x128xf32>
    %c0_8 = arith.constant 0 : index
    %c0_9 = arith.constant 0 : index
    %33 = vector.load %arg5[%c0_8, %c0_9] : memref<8x128xf32, #tpu.memory_space<vmem>>, vector<8x128xf32>
    %cst_10 = arith.constant dense<0.000000e+00> : vector<8x128xf32>
    %34 = tpu.matmul %33, %31, %cst_10 {dimension_numbers = #tpu.dot_dimension_numbers<[1], [0], [0], [1], [0, 0, 1, 1], [], []>} : vector<8x128xf32>, vector<128x128xf32>, vector<8x128xf32> -> vector<8x128xf32>
    %35 = arith.addf %32, %34 : vector<8x128xf32>
    %c0_11 = arith.constant 0 : index
    %c0_12 = arith.constant 0 : index
    %36 = vector.load %arg8[%c0_11, %c0_12] : memref<8x128xf32, #tpu.memory_space<vmem>>, vector<8x128xf32>
    tpu.vector_store %arg8[%c0_11, %c0_12], %35 {strides = array<i32>} : memref<8x128xf32, #tpu.memory_space<vmem>>, vector<8x128xf32>,
    %c0_i32_13 = arith.constant 0 : i32
    %37 = arith.cmpi eq, %arg1, %c0_i32_13 : i32
    %38 = arith.extui %37 : i1 to i32
    %c0_i32_14 = arith.constant 0 : i32
    %39 = arith.cmpi ne, %38, %c0_i32_14 : i32
    scf.if %39 {
      %c0_15 = arith.constant 0 : index
      %c0_16 = arith.constant 0 : index
      %40 = vector.load %arg8[%c0_15, %c0_16] : memref<8x128xf32, #tpu.memory_space<vmem>>, vector<8x128xf32>
      %c0_17 = arith.constant 0 : index
      %c0_18 = arith.constant 0 : index
      %41 = vector.load %arg7[%c0_17, %c0_18] : memref<8x128xf32, #tpu.memory_space<vmem>>, vector<8x128xf32>
      tpu.vector_store %arg7[%c0_17, %c0_18], %40 {strides = array<i32>} : memref<8x128xf32, #tpu.memory_space<vmem>>, vector<8x128xf32>,
    } else {
    }
    return
  }
  func.func @transform_0(%arg0: i32, %arg1: i32) -> (i32, i32) {
    %c0_i32 = arith.constant 0 : i32
    %c0_i32_0 = arith.constant 0 : i32
    return %c0_i32, %arg0 : i32, i32
  }
  func.func @transform_1(%arg0: i32, %arg1: i32) -> (i32, i32) {
    %c0_i32 = arith.constant 0 : i32
    %c0_i32_0 = arith.constant 0 : i32
    return %c0_i32, %arg0 : i32, i32
  }
  func.func @transform_2(%arg0: i32, %arg1: i32) -> (i32, i32) {
    %c0_i32 = arith.constant 0 : i32
    %c0_i32_0 = arith.constant 0 : i32
    return %arg1, %c0_i32 : i32, i32
  }
  func.func @transform_3(%arg0: i32, %arg1: i32) -> (i32, i32) {
    %c0_i32 = arith.constant 0 : i32
    %c0_i32_0 = arith.constant 0 : i32
    return %c0_i32, %arg1 : i32, i32
  }
  func.func @transform_4(%arg0: i32, %arg1: i32) -> (i32, i32) {
    %c0_i32 = arith.constant 0 : i32
    %c0_i32_0 = arith.constant 0 : i32
    %c0_i32_1 = arith.constant 0 : i32
    return %c0_i32, %c0_i32_0 : i32, i32
  }
  func.func @transform_5(%arg0: i32, %arg1: i32) -> (i32, i32) {
    %c0_i32 = arith.constant 0 : i32
    %c0_i32_0 = arith.constant 0 : i32
    return %c0_i32, %arg0 : i32, i32
  }
}

</mosaic_0001>

<bundles_post_ra>
// kernel: tpu_custom_call.1
= control target key start
LH: loop header
LB: loop body
LE: loop exit
PB: predicated region body
PF: predicated region fallthrough
CT: control target
= control target key end

     0   :  { %10 = vsyncpa [#allocation4], 0  ;;  %s1845_s0 = inlined_call_operand.vmem [shape: f32[3,256], index: 0, kind: input, shape index: {}]   ;;  %s1846_s1 = inlined_call_operand.vmem [shape: f32[1,256], index: 1, kind: input, shape index: {}]   ;;  %s1847_s2 = inlined_call_operand.vmem [shape: f32[128,4], index: 2, kind: input, shape index: {}]   ;;  %s1848_s3 = inlined_call_operand.vmem [shape: f32[8,128], index: 3, kind: input, shape index: {}]   ;;  %s1849_s4 = inlined_call_operand.vmem [shape: f32[8,4], index: 4, kind: input, shape index: {}]   ;;  %s1850_s5 = inlined_call_operand.hbm [shape: f32[8,256], index: 5, kind: output, shape index: {}]  }
   0x1   :  { %12 = vsyncpa [#allocation4 + $0x1], 0  ;;  %s1431_s18 = smov 0   ;;  %s1433_s19 = smov 0  }
   0x2   :  { %s1435_s20 = smov 0   ;;  %s1437_s21 = smov 0  }
   0x3   :  { %s1439_s22 = smov 0   ;;  %s1441_s23 = smov 0  }
   0x4 LB: > { %s1090_s24 = sadd.s32 4294967295, %s1391_s23   ;;  %s1091_s25 = sadd.s32 4294967294, %s1391_s23   ;;  %s1391_s23 = sphi %s1441_s23, %s18_s23   ;;  %s1387_s22 = sphi %s1439_s22, %s1857_s22   ;;  %s1383_s21 = sphi %s1437_s21, %s1856_s21   ;;  %s1379_s20 = sphi %s1435_s20, %s1855_s20   ;;  %s1375_s19 = sphi %s1433_s19, %s1854_s19   ;;  %s1371_s18 = sphi %s1431_s18, %s1853_s18  }
   0x5   : > { %s30_s26 = sadd.s32 1, %s1387_s22  ;;  %s162_s27 = sadd.s32 1, %s1379_s20 }
   0x6   : > { %p32_p0 = scmp.ge.s32.totalorder %s30_s26, 2  ;;  %p172_p1 = scmp.ne.s32.totalorder %s1379_s20, %s1375_s19 }
   0x7   : > { %p173_p2 = scmp.eq.s32.totalorder %s1090_s24, 1  ;;  %p178_p3 = scmp.ne.s32.totalorder %s1375_s19, %s1371_s18 }
   0x8   : > { %s1859_s26 = smov (%p32_p0, %s30_s26), 0  ;;  %p179_p5 = scmp.eq.s32.totalorder %s1091_s25, 1 }
   0x9   : > { %p1471_p4 = por %p173_p2, %p172_p1  ;;  %s159_s29 = ssub.s32 %s1387_s22, %s1859_s26 }
   0xa   : > { %p1096_p6 = scmp.ge.s32.totalorder %s1391_s23, 1  ;;  %p160_p7 = scmp.eq.s32.totalorder %s159_s29, 0 }
   0xb   : > { %p1478_p8 = por %p179_p5, %p178_p3  ;;  %p229_p9 = scmp.lt.s32.totalorder %s1391_s23, 3 }
   0xc   : > { %s1484_s6 = scalar_select %p160_p7, %s1379_s20, %s162_s27  }
   0xd   : > { %p230_p10 = pnand %p1096_p6, %p229_p9 }
   0xe   : > { %v328_v0 = vld [vmem:[%s1847_s2] sm:$0xff] (!%p230_p10)  ;;  %v1393_v1 = vmov (!%p230_p10), 1   ;;  %v1394_v2 = vmov (!%p230_p10), 0   ;;  %v331_v3 = vld [vmem:[%s1847_s2 + $0x18] sm:$0xff] (!%p230_p10)  ;;  %v329_v4 = vld [vmem:[%s1847_s2 + $0x8] sm:$0xff] (!%p230_p10)  ;;  %v1395_v8 = vmov (!%p230_p10), 3   ;;  %v301_v34 = vlaneseq (!%p230_p10) }
   0xf   : > { %233 = sbr.rel (%p230_p10) target bundleno = 594 (0x252), region = 40  ;;  %1243 = vset.pattern.permute.xlu0 (!%p230_p10), %v1393_v1  ;;  %1242 = vset.pattern.permute.xlu1 (!%p230_p10), %v1394_v2  ;;  %v334_v5 = vld [vmem:[%s1847_s2 + $0x30] sm:$0xff] (!%p230_p10)  ;;  %v1504_v6 = vld [vmem:[%s1847_s2 + $0x48] sm:$0xff] (!%p230_p10)  ;;  %v332_v9 = vld [vmem:[%s1847_s2 + $0x20] sm:$0xff] (!%p230_p10)  ;;  %v1396_v13 = vmov (!%p230_p10), 2   ;;  %v1397_v18 = vmov (!%p230_p10), 0.0|0.0  }
  0x10   : > { %548 = vperm.xlu0 (!%p230_p10), %1243, %v328_v0   ;;  %448 = vperm.xlu1 (!%p230_p10), %1242, %v328_v0   ;;  %v330_v7 = vld [vmem:[%s1847_s2 + $0x10] sm:$0xff] (!%p230_p10)  ;;  %v1519_v10 = vld [vmem:[%s1847_s2 + $0x38] sm:$0xff] (!%p230_p10)  ;;  %v1531_v12 = vld [vmem:[%s1847_s2 + $0x68] sm:$0xff] (!%p230_p10)  ;;  %p268_p11 = scmp.lt.s32.totalorder (!%p230_p10), %s1383_s21, 1  ;;  %v302_v37 = vshrl.u32 (!%p230_p10), %v301_v34, 7  ;;  %vm1398_vm8 = vmmov (!%p230_p10), 0  }
  0x11   : > { %v1525_v11 = vld [vmem:[%s1847_s2 + $0x50] sm:$0xff] (!%p230_p10)  ;;  %v333_v14 = vld [vmem:[%s1847_s2 + $0x28] sm:$0xff] (!%p230_p10)  ;;  %v1547_v15 = vld [vmem:[%s1847_s2 + $0x60] sm:$0xff] (!%p230_p10)  ;;  %1156 = vmatprep.subr.bf16.mxu0 (!%p230_p10), %v1397_v18  ;;  %s265_s29 = sand.u32 (!%p230_p10), 1, %s1375_s19   ;;  %s1101_s8 = sshll.u32 (!%p230_p10), %s1383_s21, 7 }
  0x12   : > { %v1553_v16 = vld [vmem:[%s1847_s2 + $0x78] sm:$0xff] (!%p230_p10)  ;;  %v336_v17 = vld [vmem:[%s1847_s2 + $0x40] sm:$0xff] (!%p230_p10)  ;;  %v303_v40 = vsub.s32 (!%p230_p10), 0, %v302_v37  ;;  %v342_v41 = vld [vmem:[%s1847_s2 + $0x70] sm:$0xff] (!%p230_p10)  ;;  %v313_v43 = vsub.s32 (!%p230_p10), 1, %v302_v37  ;;  %v323_v51 = vsub.s32 (!%p230_p10), 2, %v302_v37 }
  0x13   : > { %v1577_v19 = vld [vmem:[%s1849_s4] sm:$0xff] (!%p230_p10)  ;;  %v339_v20 = vld [vmem:[%s1847_s2 + $0x58] sm:$0xff] (!%p230_p10)  ;;  %s1097_s7 = sshll.u32 (!%p230_p10), %s265_s29, 3  ;;  %s971_s14 = scalar_lea.sflag (!%p230_p10), [#allocation4], %s265_s29 }
  0x14   : > { %560 = vperm.xlu0 (!%p230_p10), %1243, %v331_v3   ;;  %452 = vperm.xlu1 (!%p230_p10), %1242, %v329_v4  }
  0x16   : > { %s269_s9 = scalar_select %p268_p11, %s1383_s21, 1 }
  0x17   : > { %s1400_s21 = smov [#allocation3]  }
  0x18   : > { %572 = vperm.xlu0 %1243, %v334_v5   ;;  %1244 = vset.pattern.permute.xlu1 %v1393_v1  ;;  %s1098_s10 = sshll.u32 %s269_s9, 2  ;;  %s274_s16 = scalar_lea.vmem %s1846_s1, %s269_s9 }
  0x19   : > { %552 = vperm.xlu1 %1244, %v329_v4   ;;  %s271_s13 = scalar_lea.vmem %s1845_s0, %s1098_s10  ;;  %v1638_v46 = vld [vmem:[%s274_s16] ss:$0 sm:$0xff]  ;;  %s267_s9 = scalar_lea.vmem [#allocation3], %s1097_s7 }
  0x1a   : > { %v285_v42 = vld [vmem:[%s271_s13] sm:$0x7]  ;;  %s984_s10 = sshll.u32 %s267_s9, 4  ;;  %s1798_s13 = scalar_lea.hbm %s1850_s5, %s1101_s8  ;;  %s1800_s10 = int_to_ptr.vmem [resolvable:$true] %s984_s10 }
  0x1b   : > { %v1640_v47 = vrot.slane %v285_v42, %v303_v40  ;;  %v1643_v49 = vrot.slane %v285_v42, %v313_v43  ;;  %v1650_v56 = vrot.slane %v285_v42, %v323_v51  ;;  %s1313_s15 = scalar_lea.vmem %s1800_s10, 128  ;;  %s1317_s16 = sshll.u32 %s1400_s21, 4  ;;  %s1318_s16 = int_to_ptr.vmem [resolvable:$false] %s1317_s16 }
  0x1c   : > { %584 = vperm.xlu0 %1243, %v1504_v6   ;;  %p1314_p12 = scmp.ne.s32.totalorder %s1800_s10, %s1313_s15  ;;  %s1319_s17 = scalar_lea.vmem %s1318_s16, 256 }
  0x1d   : > { %1245 = vset.pattern.permute.xlu1 %v1395_v8  ;;  %p1320_p1 = scmp.lt.s32.totalorder %s1800_s10, %s1318_s16  ;;  %p1321_p2 = scmp.lt.s32.totalorder %s1319_s17, %s1313_s15 }
  0x1e   : > { %357 = vperm.xlu1 %1245, %v330_v7   ;;  %p1315_p13 = pnand %p1314_p12, %p1471_p4 }
  0x1f   : > { %p1322_p3 = por %p1321_p2, %p1320_p1 }
  0x20   : > { %1261 = vset.pattern.permute.xlu0 %v1394_v2  ;;  %p1316_p0 = pneg %p1315_p13 }
  0x21   : > { %464 = vperm.xlu0 %1261, %v332_v9  }
  0x22   : > { %1246 = vset.pattern.permute.xlu1 %v1394_v2  ;;  %p1323_p5 = pnand %p1322_p3, %p1316_p0 }
  0x23   : > { %456 = vperm.xlu1 %1246, %v330_v7  }
  0x25   : > { %476 = vperm.xlu0 %1261, %v1519_v10  }
  0x27   : > { %460 = vperm.xlu1 %1246, %v331_v3  }
  0x29   : > { %488 = vperm.xlu0 %1261, %v1525_v11  }
  0x2b   : > { %1247 = vset.pattern.permute.xlu1 %v1396_v13 }
  0x2c   : > { %652 = vperm.xlu1 %1247, %v329_v4  }
  0x2d   : > { %500 = vperm.xlu0 %1261, %v1531_v12  }
  0x30   : > { %1248 = vset.pattern.permute.xlu1 %v1393_v1 }
  0x31   : > { %1268 = vset.pattern.permute.xlu0 %v1395_v8  ;;  %556 = vperm.xlu1 %1248, %v330_v7  }
  0x32   : > { %347 = vperm.xlu0 %1268, %v328_v0  }
  0x35   : > { %1249 = vset.pattern.permute.xlu1 %v1395_v8 }
  0x36   : > { %352 = vperm.xlu0 %1268, %v329_v4   ;;  %367 = vperm.xlu1 %1249, %v332_v9  }
  0x3a   : > { %362 = vperm.xlu0 %1268, %v331_v3   ;;  %372 = vperm.xlu1 %1249, %v333_v14  }
  0x3e   : > { %377 = vperm.xlu0 %1268, %v334_v5   ;;  %1250 = vset.pattern.permute.xlu1 %v1394_v2 }
  0x3f   : > { %468 = vperm.xlu1 %1250, %v333_v14  }
  0x42   : > { %392 = vperm.xlu0 %1268, %v1504_v6  }
  0x43   : > { %1251 = vset.pattern.permute.xlu1 %v1396_v13 }
  0x44   : > { %656 = vperm.xlu1 %1251, %v330_v7  }
  0x46   : > { %407 = vperm.xlu0 %1268, %v1547_v15  }
  0x48   : > { %1252 = vset.pattern.permute.xlu1 %v1393_v1 }
  0x49   : > { %564 = vperm.xlu1 %1252, %v332_v9  }
  0x4a   : > { %422 = vperm.xlu0 %1268, %v1553_v16  }
  0x4d   : > { %568 = vperm.xlu1 %1252, %v333_v14  }
  0x4e   : > { %1272 = vset.pattern.permute.xlu0 %v1396_v13 }
  0x4f   : > { %648 = vperm.xlu0 %1272, %v328_v0  }
  0x51   : > { %1253 = vset.pattern.permute.xlu1 %v1395_v8 }
  0x52   : > { %382 = vperm.xlu1 %1253, %v1519_v10  }
  0x53   : > { %660 = vperm.xlu0 %1272, %v331_v3  }
  0x56   : > { %1254 = vset.pattern.permute.xlu1 %v1394_v2 }
  0x57   : > { %472 = vperm.xlu1 %1254, %v334_v5   ;;  %672 = vperm.xlu0 %1272, %v334_v5  }
  0x5b   : > { %1255 = vset.pattern.permute.xlu1 %v1396_v13  ;;  %684 = vperm.xlu0 %1272, %v1504_v6  }
  0x5c   : > { %664 = vperm.xlu1 %1255, %v332_v9  }
  0x5f   : > { %696 = vperm.xlu0 %1272, %v1547_v15  }
  0x60   : > { %668 = vperm.xlu1 %1255, %v333_v14  }
  0x63   : > { %1274 = vset.pattern.permute.xlu0 %v1393_v1 }
  0x64   : > { %1256 = vset.pattern.permute.xlu1 %v1393_v1  ;;  %596 = vperm.xlu0 %1274, %v1547_v15  }
  0x65   : > { %576 = vperm.xlu1 %1256, %v1519_v10  }
  0x68   : > { %608 = vperm.xlu0 %1274, %v1553_v16  }
  0x69   : > { %1257 = vset.pattern.permute.xlu1 %v1395_v8 }
  0x6a   : > { %387 = vperm.xlu1 %1257, %v336_v17  }
  0x6c   : > { %298 = vperm.xlu0 %1274, %v1577_v19  }
  0x6e   : > { %1258 = vset.pattern.permute.xlu1 %v1394_v2 }
  0x6f   : > { %480 = vperm.xlu1 %1258, %v336_v17  }
  0x70   : > { %1279 = vset.pattern.permute.xlu0 %v1396_v13 }
  0x71   : > { %308 = vperm.xlu0 %1279, %v1577_v19  }
  0x73   : > { %484 = vperm.xlu1 %1258, %v1504_v6  }
  0x77   : > { %1259 = vset.pattern.permute.xlu1 %v1396_v13 }
  0x78   : > { %676 = vperm.xlu1 %1259, %v1519_v10  }
  0x7c   : > { %1260 = vset.pattern.permute.xlu1 %v1393_v1 }
  0x7d   : > { %580 = vperm.xlu1 %1260, %v336_v17  }
  0x81   : > { %1262 = vset.pattern.permute.xlu1 %v1395_v8 }
  0x82   : > { %397 = vperm.xlu1 %1262, %v1525_v11  }
  0x86   : > { %402 = vperm.xlu1 %1262, %v339_v20  }
  0x8a   : > { %1263 = vset.pattern.permute.xlu1 %v1394_v2 }
  0x8b   : > { %492 = vperm.xlu1 %1263, %v339_v20  }
  0x8f   : > { %1264 = vset.pattern.permute.xlu1 %v1396_v13  ;;  %v1594_v21 = vpop.permute.xlu1 %448  ;;  %v1596_v22 = vpop.permute.xlu0 %548 }
  0x90   : > { %680 = vperm.xlu1 %1264, %v336_v17  }
  0x93   : > { %v453_v23 = vpop.permute.xlu1 %452  ;;  %v1598_v24 = vpop.permute.xlu0 %560 }
  0x94   : > { %1265 = vset.pattern.permute.xlu1 %v1393_v1  ;;  %v516_v50 = vmul.f32 %v453_v23, %v1640_v47  ;;  %v618_v34 = vmul.f32 %v1598_v24, %v1643_v49 }
  0x95   : > { %588 = vperm.xlu1 %1265, %v1525_v11  }
  0x97   : > { %v1602_v25 = vpop.permute.xlu0 %572 }
  0x98   : > { %v553_v26 = vpop.permute.xlu1 %552 }
  0x99   : > { %592 = vperm.xlu1 %1265, %v339_v20   ;;  %v616_v55 = vmul.f32 %v553_v26, %v1643_v49 }
  0x9b   : > { %v1604_v27 = vpop.permute.xlu0 %584 }
  0x9d   : > { %1266 = vset.pattern.permute.xlu1 %v1395_v8  ;;  %v358_v28 = vpop.permute.xlu1 %357 }
  0x9e   : > { %412 = vperm.xlu1 %1266, %v1531_v12   ;;  %v433_v63 = vadd.f32 %v1638_v46, %v358_v28 }
  0xa0   : > { %v1608_v29 = vpop.permute.xlu0 %464 }
  0xa1   : > { %v519_v24 = vmul.f32 %v1608_v29, %v1640_v47 }
  0xa2   : > { %1267 = vset.pattern.permute.xlu1 %v1394_v2  ;;  %v457_v30 = vpop.permute.xlu1 %456 }
  0xa3   : > { %496 = vperm.xlu1 %1267, %v1547_v15   ;;  %v517_v60 = vmul.f32 %v457_v30, %v1640_v47  ;;  %v515_v15 = vmul.f32 %v1594_v21, %v1640_v47 }
  0xa4   : > { %v1612_v31 = vpop.permute.xlu0 %476 }
  0xa5   : > { %v533_v5 = vadd.f32 %v517_v60, %v433_v63 }
  0xa6   : > { %v1615_v32 = vpop.permute.xlu1 %460 }
  0xa7   : > { %1269 = vset.pattern.permute.xlu1 %v1396_v13 }
  0xa8   : > { %688 = vperm.xlu1 %1269, %v1525_v11   ;;  %v1619_v33 = vpop.permute.xlu0 %488 }
  0xab   : > { %v653_v35 = vpop.permute.xlu1 %652 }
  0xac   : > { %692 = vperm.xlu1 %1269, %v339_v20   ;;  %v1622_v36 = vpop.permute.xlu0 %500  ;;  %v716_v61 = vmul.f32 %v653_v35, %v1650_v56 }
  0xb0   : > { %1270 = vset.pattern.permute.xlu1 %v1393_v1  ;;  %v557_v38 = vpop.permute.xlu1 %556 }
  0xb1   : > { %v348_v39 = vpop.permute.xlu0 %347  ;;  %600 = vperm.xlu1 %1270, %v1531_v12   ;;  %v617_v0 = vmul.f32 %v557_v38, %v1643_v49 }
  0xb2   : > { %v431_v10 = vadd.f32 %v1638_v46, %v348_v39 }
  0xb3   : > { %v633_v9 = vadd.f32 %v617_v0, %v533_v5 }
  0xb4   : > { %v531_v23 = vadd.f32 %v515_v15, %v431_v10 }
  0xb5   : > { %v353_v44 = vpop.permute.xlu0 %352  ;;  %1271 = vset.pattern.permute.xlu1 %v1395_v8  ;;  %v1636_v45 = vpop.permute.xlu1 %367 }
  0xb6   : > { %417 = vperm.xlu1 %1271, %v342_v41   ;;  %v432_v48 = vadd.f32 %v1638_v46, %v353_v44  ;;  %v435_v44 = vadd.f32 %v1638_v46, %v1636_v45 }
  0xb8   : > { %v532_v54 = vadd.f32 %v516_v50, %v432_v48 }
  0xb9   : > { %v363_v52 = vpop.permute.xlu0 %362  ;;  %v1646_v53 = vpop.permute.xlu1 %372 }
  0xba   : > { %1273 = vset.pattern.permute.xlu1 %v1394_v2  ;;  %v632_v59 = vadd.f32 %v616_v55, %v532_v54  ;;  %v434_v26 = vadd.f32 %v1638_v46, %v363_v52  ;;  %v535_v52 = vadd.f32 %v519_v24, %v435_v44  ;;  %v436_v29 = vadd.f32 %v1638_v46, %v1646_v53 }
  0xbb   : > { %504 = vperm.xlu1 %1273, %v342_v41  }
  0xbc   : > { %v732_v3 = vadd.f32 %v716_v61, %v632_v59 }
  0xbd   : > { %v1652_v57 = vpop.permute.xlu0 %377 }
  0xbe   : > { %v469_v58 = vpop.permute.xlu1 %468  ;;  %v1667_v11 = vmax.f32 %v732_v3, 0.0  ;;  %v437_v3 = vadd.f32 %v1638_v46, %v1652_v57 }
  0xbf   : > { %508 = vperm.xlu1 %1273, %v1553_v16   ;;  %v520_v54 = vmul.f32 %v469_v58, %v1640_v47 }
  0xc0   : > { %1281 = vrsqrt.f32 %v1667_v11  ;;  %vm772_vm0 = vcmp.eq.f32.partialorder %v1667_v11, inf  ;;  %v775_v58 = vand.u32 2147483648, %v1667_v11  ;;  %vm774_vm1 = vcmp.eq.f32.partialorder %v1667_v11, 0.0 }
  0xc1   : > { %v1657_v62 = vpop.permute.xlu0 %392  ;;  %v536_v63 = vadd.f32 %v520_v54, %v436_v29 }
  0xc3   : > { %1275 = vset.pattern.permute.xlu1 %v1396_v13  ;;  %v657_v4 = vpop.permute.xlu1 %656 }
  0xc4   : > { %700 = vperm.xlu1 %1275, %v1531_v12   ;;  %v717_v6 = vmul.f32 %v657_v4, %v1650_v56  ;;  %v615_v12 = vmul.f32 %v1596_v22, %v1643_v49 }
  0xc5   : > { %v1664_v7 = vpop.permute.xlu0 %407 }
  0xc6   : > { %v733_v17 = vadd.f32 %v717_v6, %v633_v9  ;;  %v631_v22 = vadd.f32 %v615_v12, %v531_v23 }
  0xc8   : > { %1276 = vset.pattern.permute.xlu1 %v1393_v1  ;;  %v565_v14 = vpop.permute.xlu1 %564  ;;  %v518_v1 = vmul.f32 %v1615_v32, %v1640_v47  ;;  %v1680_v30 = vmax.f32 %v733_v17, 0.0 }
  0xc9   : > { %604 = vperm.xlu1 %1276, %v342_v41   ;;  %v1672_v20 = vpop.permute.xlu0 %422 }
  0xca   : > { %v534_v35 = vadd.f32 %v518_v1, %v434_v26  ;;  %1283 = vrsqrt.f32 %v1680_v30  ;;  %vm779_vm2 = vcmp.eq.f32.partialorder %v1680_v30, inf  ;;  %v621_v26 = vmul.f32 %v1602_v25, %v1643_v49 }
  0xcb   : > { %vm781_vm5 = vcmp.eq.f32.partialorder %v1680_v30, 0.0  ;;  %v782_v1 = vand.u32 2147483648, %v1680_v30 }
  0xcc   : > { %v569_v28 = vpop.permute.xlu1 %568  ;;  %v634_v42 = vadd.f32 %v618_v34, %v534_v35 }
  0xcd   : > { %1277 = vset.pattern.permute.xlu1 %v1396_v13  ;;  %v620_v45 = vmul.f32 %v569_v28, %v1643_v49 }
  0xce   : > { %v649_v21 = vpop.permute.xlu0 %648  ;;  %704 = vperm.xlu1 %1277, %v342_v41   ;;  %v1282_v41 = vpop.eup %1281 }
  0xcf   : > { %v715_v37 = vmul.f32 %v649_v21, %v1650_v56  ;;  %v771_v51 = vmul.f32 %v1282_v41, %v1667_v11  ;;  %v636_v6 = vadd.f32 %v620_v45, %v536_v63  ;;  %v440_v45 = vadd.f32 %v1638_v46, %v1657_v62 }
  0xd1   : > { %v731_v38 = vadd.f32 %v715_v37, %v631_v22  ;;  %v1686_v39 = vpop.permute.xlu1 %382  ;;  %v773_v61 = vsel %vm772_vm0, %v1667_v11, %v771_v51 }
  0xd2   : > { %v661_v40 = vpop.permute.xlu0 %660  ;;  %708 = vperm.xlu1 %1277, %v1553_v16   ;;  %v619_v16 = vmul.f32 %v565_v14, %v1643_v49  ;;  %v776_v5 = vsel %vm774_vm1, %v775_v58, %v773_v61 }
  0xd3   : > { %v747_v32 = vmax.f32 %v731_v38, 0.0  ;;  %v718_v13 = vmul.f32 %v661_v40, %v1650_v56  ;;  %v876_v22 = vmul.f32 %v776_v5, %v1667_v11 }
  0xd4   : > { %v1284_v55 = vpop.eup %1283 }
  0xd5   : > { %v734_v43 = vadd.f32 %v718_v13, %v634_v42  ;;  %1285 = vrsqrt.f32 %v747_v32  ;;  %v778_v53 = vmul.f32 %v1284_v55, %v1680_v30  ;;  %vm765_vm3 = vcmp.eq.f32.partialorder %v747_v32, inf }
  0xd6   : > { %1278 = vset.pattern.permute.xlu1 %v1394_v2  ;;  %v473_v48 = vpop.permute.xlu1 %472  ;;  %v635_v2 = vadd.f32 %v619_v16, %v535_v52  ;;  %vm767_vm4 = vcmp.eq.f32.partialorder %v747_v32, 0.0  ;;  %v768_v15 = vand.u32 2147483648, %v747_v32  ;;  %v673_v25 = vpop.permute.xlu0 %672  ;;  %v1399_v52 = vmov 0.0  }
  0xd7   : > { %v750_v50 = vmax.f32 %v734_v43, 0.0  ;;  %293 = vperm.xlu1 %1278, %v1577_v19   ;;  %v521_v14 = vmul.f32 %v473_v48, %v1640_v47  ;;  %v780_v23 = vsel %vm779_vm2, %v1680_v30, %v778_v53  ;;  %1153 = vmatprep.mubr.msk.f32.mxu0 %vm1398_vm8, %v1399_v52 }
  0xd8   : > { %v783_v40 = vsel %vm781_vm5, %v782_v1, %v780_v23 }
  0xd9   : > { %1287 = vrsqrt.f32 %v750_v50  ;;  %v537_v38 = vadd.f32 %v521_v14, %v437_v3  ;;  %vm786_vm6 = vcmp.eq.f32.partialorder %v750_v50, inf  ;;  %v789_v42 = vand.u32 2147483648, %v750_v50 }
  0xda   : > { %vm788_vm7 = vcmp.eq.f32.partialorder %v750_v50, 0.0  ;;  %v877_v24 = vmul.f32 %v783_v40, %v1680_v30 }
  0xdb   : > { %v665_v59 = vpop.permute.xlu1 %664  ;;  %1280 = vset.pattern.permute.xlu1 %v1395_v8  ;;  %v637_v11 = vadd.f32 %v621_v26, %v537_v38  ;;  %v685_v26 = vpop.permute.xlu0 %684 }
  0xdc   : > { %v719_v60 = vmul.f32 %v665_v59, %v1650_v56  ;;  %318 = vperm.xlu1 %1280, %v1577_v19   ;;  %v522_v59 = vmul.f32 %v1612_v31, %v1640_v47 }
  0xde   : > { %v735_v0 = vadd.f32 %v719_v60, %v635_v2  ;;  %v438_v60 = vadd.f32 %v1638_v46, %v1686_v39 }
  0xdf   : > { %v1286_v8 = vpop.eup %1285  ;;  %v669_v4 = vpop.permute.xlu1 %668 }
  0xe0   : > { %v1714_v19 = vmax.f32 %v735_v0, 0.0  ;;  %v720_v9 = vmul.f32 %v669_v4, %v1650_v56  ;;  %v764_v10 = vmul.f32 %v1286_v8, %v747_v32  ;;  %v624_v8 = vmul.f32 %v1604_v27, %v1643_v49 }
  0xe2   : > { %v736_v17 = vadd.f32 %v720_v9, %v636_v6  ;;  %v766_v12 = vsel %vm765_vm3, %v747_v32, %v764_v10  ;;  %1289 = vrsqrt.f32 %v1714_v19  ;;  %vm793_vm9 = vcmp.eq.f32.partialorder %v1714_v19, inf }
  0xe3   : > { %v1288_v57 = vpop.eup %1287  ;;  %v769_v28 = vsel %vm767_vm4, %v768_v15, %v766_v12  ;;  %v796_v2 = vand.u32 2147483648, %v1714_v19  ;;  %vm795_vm10 = vcmp.eq.f32.partialorder %v1714_v19, 0.0  ;;  %v538_v9 = vadd.f32 %v522_v59, %v438_v60 }
  0xe4   : > { %v752_v21 = vmax.f32 %v736_v17, 0.0  ;;  %v577_v34 = vpop.permute.xlu1 %576  ;;  %v875_v35 = vmul.f32 %v769_v28, %v747_v32  ;;  %v785_v37 = vmul.f32 %v1288_v57, %v750_v50  ;;  %v721_v32 = vmul.f32 %v673_v25, %v1650_v56 }
  0xe5   : > { %v622_v62 = vmul.f32 %v577_v34, %v1643_v49 }
  0xe6   : > { %v1157_v13 = vpack.c.bf16 %v876_v22, %v875_v35  ;;  %v787_v41 = vsel %vm786_vm6, %v750_v50, %v785_v37  ;;  %1291 = vrsqrt.f32 %v752_v21  ;;  %v737_v55 = vadd.f32 %v721_v32, %v637_v11 }
  0xe7   : > { %v790_v43 = vsel %vm788_vm7, %v789_v42, %v787_v41  ;;  %vm800_vm11 = vcmp.eq.f32.partialorder %v752_v21, inf  ;;  %v803_v53 = vand.u32 2147483648, %v752_v21  ;;  %vm802_vm12 = vcmp.eq.f32.partialorder %v752_v21, 0.0 }
  0xe8   : > { %1158 = vmatpush3.bf16.msra.mxu0 %v1157_v13  ;;  %v878_v44 = vmul.f32 %v790_v43, %v750_v50  ;;  %v753_v58 = vmax.f32 %v737_v55, 0.0  ;;  %v638_v17 = vadd.f32 %v622_v62, %v538_v9 }
  0xe9   : > { %v1726_v48 = vpop.permute.xlu1 %387  ;;  %1159 = vmatprep.subr.bf16.mxu0 %v1397_v18 }
  0xea   : > { %v1160_v16 = vpack.c.bf16 %v878_v44, %v877_v24  ;;  %1293 = vrsqrt.f32 %v753_v58  ;;  %vm807_vm13 = vcmp.eq.f32.partialorder %v753_v58, inf  ;;  %v810_v38 = vand.u32 2147483648, %v753_v58 }
  0xeb   : > { %vm809_vm14 = vcmp.eq.f32.partialorder %v753_v58, 0.0  ;;  %v439_v44 = vadd.f32 %v1638_v46, %v1726_v48 }
  0xec   : > { %v1290_v51 = vpop.eup %1289  ;;  %1161 = vmatpush3.bf16.msra.mxu0 %v1160_v16 }
  0xed   : > { %1162 = vmatprep.subr.bf16.mxu0 %v1397_v18  ;;  %v792_v54 = vmul.f32 %v1290_v51, %v1714_v19 }
  0xee   : > { %v481_v30 = vpop.permute.xlu1 %480 }
  0xef   : > { %v794_v50 = vsel %vm793_vm9, %v1714_v19, %v792_v54  ;;  %v523_v40 = vmul.f32 %v481_v30, %v1640_v47 }
  0xf0   : > { %v1292_v29 = vpop.eup %1291  ;;  %v797_v0 = vsel %vm795_vm10, %v796_v2, %v794_v50 }
  0xf1   : > { %v799_v61 = vmul.f32 %v1292_v29, %v752_v21  ;;  %v879_v39 = vmul.f32 %v797_v0, %v1714_v19  ;;  %v724_v19 = vmul.f32 %v685_v26, %v1650_v56  ;;  %v539_v52 = vadd.f32 %v523_v40, %v439_v44  ;;  %v697_v26 = vpop.permute.xlu0 %696 }
  0xf2   : > { %v485_v63 = vpop.permute.xlu1 %484  ;;  %v443_v40 = vadd.f32 %v1638_v46, %v1664_v7 }
  0xf3   : > { %v524_v31 = vmul.f32 %v485_v63, %v1640_v47  ;;  %v801_v3 = vsel %vm800_vm11, %v752_v21, %v799_v61 }
  0xf4   : > { %v804_v4 = vsel %vm802_vm12, %v803_v53, %v801_v3  ;;  %v1294_v28 = vpop.eup %1293  ;;  %v525_v53 = vmul.f32 %v1619_v33, %v1640_v47 }
  0xf5   : > { %v540_v5 = vadd.f32 %v524_v31, %v440_v45  ;;  %v880_v6 = vmul.f32 %v804_v4, %v752_v21  ;;  %v806_v21 = vmul.f32 %v1294_v28, %v753_v58 }
  0xf7   : > { %v640_v10 = vadd.f32 %v624_v8, %v540_v5  ;;  %v677_v14 = vpop.permute.xlu1 %676  ;;  %v1163_v15 = vpack.c.bf16 %v880_v6, %v879_v39  ;;  %v808_v22 = vsel %vm807_vm13, %v753_v58, %v806_v21 }
  0xf8   : > { %v722_v12 = vmul.f32 %v677_v14, %v1650_v56  ;;  %v811_v25 = vsel %vm809_vm14, %v810_v38, %v808_v22 }
  0xf9   : > { %1164 = vmatpush3.bf16.msra.mxu0 %v1163_v15  ;;  %v740_v35 = vadd.f32 %v724_v19, %v640_v10  ;;  %v881_v16 = vmul.f32 %v811_v25, %v753_v58 }
  0xfa   : > { %v738_v27 = vadd.f32 %v722_v12, %v638_v17  ;;  %1165 = vmatprep.subr.bf16.mxu0 %v1397_v18 }
  0xfb   : > { %v756_v13 = vmax.f32 %v740_v35, 0.0 }
  0xfc   : > { %v754_v23 = vmax.f32 %v738_v27, 0.0  ;;  %v581_v57 = vpop.permute.xlu1 %580 }
  0xfd   : > { %v623_v11 = vmul.f32 %v581_v57, %v1643_v49  ;;  %vm828_vm1 = vcmp.eq.f32.partialorder %v756_v13, inf  ;;  %v831_v0 = vand.u32 2147483648, %v756_v13  ;;  %vm830_vm2 = vcmp.eq.f32.partialorder %v756_v13, 0.0 }
  0xfe   : > { %1295 = vrsqrt.f32 %v754_v23  ;;  %vm814_vm15 = vcmp.eq.f32.partialorder %v754_v23, inf  ;;  %v817_v43 = vand.u32 2147483648, %v754_v23  ;;  %vm816_vm0 = vcmp.eq.f32.partialorder %v754_v23, 0.0 }
  0xff   : > { %1297 = vrsqrt.f32 %v756_v13  ;;  %v639_v30 = vadd.f32 %v623_v11, %v539_v52 }
 0x101   : > { %v398_v1 = vpop.permute.xlu1 %397 }
 0x102   : > { %v441_v31 = vadd.f32 %v1638_v46, %v398_v1 }
 0x104   : > { %v541_v14 = vadd.f32 %v525_v53, %v441_v31 }
 0x105   : > { %v403_v34 = vpop.permute.xlu1 %402 }
 0x106   : > { %v442_v12 = vadd.f32 %v1638_v46, %v403_v34  ;;  %v597_v34 = vpop.permute.xlu0 %596 }
 0x107   : > { %v627_v25 = vmul.f32 %v597_v34, %v1643_v49 }
 0x108   : > { %v1296_v37 = vpop.eup %1295 }
 0x109   : > { %v813_v42 = vmul.f32 %v1296_v37, %v754_v23  ;;  %v1298_v48 = vpop.eup %1297 }
 0x10a   : > { %v493_v41 = vpop.permute.xlu1 %492  ;;  %v827_v60 = vmul.f32 %v1298_v48, %v756_v13 }
 0x10b   : > { %v815_v24 = vsel %vm814_vm15, %v754_v23, %v813_v42  ;;  %v526_v15 = vmul.f32 %v493_v41, %v1640_v47 }
 0x10c   : > { %v818_v32 = vsel %vm816_vm0, %v817_v43, %v815_v24  ;;  %v829_v58 = vsel %vm828_vm1, %v756_v13, %v827_v60  ;;  %v727_v24 = vmul.f32 %v697_v26, %v1650_v56 }
 0x10d   : > { %v882_v51 = vmul.f32 %v818_v32, %v754_v23  ;;  %v832_v4 = vsel %vm830_vm2, %v831_v0, %v829_v58  ;;  %v542_v28 = vadd.f32 %v526_v15, %v442_v12  ;;  %v446_v15 = vadd.f32 %v1638_v46, %v1672_v20 }
 0x10e   : > { %v884_v10 = vmul.f32 %v832_v4, %v756_v13 }
 0x10f   : > { %v681_v54 = vpop.permute.xlu1 %680  ;;  %v1166_v55 = vpack.c.bf16 %v882_v51, %v881_v16 }
 0x110   : > { %v723_v50 = vmul.f32 %v681_v54, %v1650_v56 }
 0x111   : > { %1167 = vmatpush3.bf16.msra.mxu0 %v1166_v55 }
 0x112   : > { %v739_v29 = vadd.f32 %v723_v50, %v639_v30  ;;  %1168 = vmatprep.subr.bf16.mxu0 %v1397_v18 }
 0x114   : > { %v755_v59 = vmax.f32 %v739_v29, 0.0  ;;  %v589_v2 = vpop.permute.xlu1 %588 }
 0x115   : > { %v625_v39 = vmul.f32 %v589_v2, %v1643_v49 }
 0x116   : > { %1299 = vrsqrt.f32 %v755_v59  ;;  %vm821_vm3 = vcmp.eq.f32.partialorder %v755_v59, inf  ;;  %v824_v62 = vand.u32 2147483648, %v755_v59  ;;  %vm823_vm4 = vcmp.eq.f32.partialorder %v755_v59, 0.0 }
 0x117   : > { %v641_v27 = vadd.f32 %v625_v39, %v541_v14 }
 0x118   : > { %v593_v45 = vpop.permute.xlu1 %592 }
 0x119   : > { %v626_v23 = vmul.f32 %v593_v45, %v1643_v49  ;;  %v528_v45 = vmul.f32 %v1622_v36, %v1640_v47 }
 0x11b   : > { %v642_v21 = vadd.f32 %v626_v23, %v542_v28 }
 0x11d   : > { %v413_v61 = vpop.permute.xlu1 %412 }
 0x11e   : > { %v444_v7 = vadd.f32 %v1638_v46, %v413_v61 }
 0x120   : > { %v1300_v63 = vpop.eup %1299  ;;  %v544_v53 = vadd.f32 %v528_v45, %v444_v7 }
 0x121   : > { %v820_v8 = vmul.f32 %v1300_v63, %v755_v59 }
 0x122   : > { %v497_v3 = vpop.permute.xlu1 %496 }
 0x123   : > { %v822_v5 = vsel %vm821_vm3, %v755_v59, %v820_v8  ;;  %v527_v37 = vmul.f32 %v497_v3, %v1640_v47 }
 0x124   : > { %v825_v6 = vsel %vm823_vm4, %v824_v62, %v822_v5 }
 0x125   : > { %v883_v9 = vmul.f32 %v825_v6, %v755_v59  ;;  %v543_v41 = vadd.f32 %v527_v37, %v443_v40 }
 0x127   : > { %v689_v17 = vpop.permute.xlu1 %688  ;;  %v1169_v33 = vpack.c.bf16 %v884_v10, %v883_v9  ;;  %v643_v44 = vadd.f32 %v627_v25, %v543_v41  ;;  %v609_v10 = vpop.permute.xlu0 %608 }
 0x128   : > { %v725_v57 = vmul.f32 %v689_v17, %v1650_v56 }
 0x129   : > { %1170 = vmatpush3.bf16.msra.mxu0 %v1169_v33  ;;  %v743_v16 = vadd.f32 %v727_v24, %v643_v44 }
 0x12a   : > { %v741_v1 = vadd.f32 %v725_v57, %v641_v27  ;;  %1171 = vmatprep.subr.bf16.mxu0 %v1397_v18  ;;  %v630_v27 = vmul.f32 %v609_v10, %v1643_v49 }
 0x12b   : > { %v693_v19 = vpop.permute.xlu1 %692  ;;  %v759_v50 = vmax.f32 %v743_v16, 0.0 }
 0x12c   : > { %v757_v35 = vmax.f32 %v741_v1, 0.0  ;;  %v726_v22 = vmul.f32 %v693_v19, %v1650_v56 }
 0x12d   : > { %vm849_vm9 = vcmp.eq.f32.partialorder %v759_v50, inf  ;;  %vm851_vm10 = vcmp.eq.f32.partialorder %v759_v50, 0.0 }
 0x12e   : > { %v742_v38 = vadd.f32 %v726_v22, %v642_v21  ;;  %1301 = vrsqrt.f32 %v757_v35  ;;  %vm835_vm5 = vcmp.eq.f32.partialorder %v757_v35, inf  ;;  %v838_v55 = vand.u32 2147483648, %v757_v35 }
 0x12f   : > { %vm837_vm6 = vcmp.eq.f32.partialorder %v757_v35, 0.0 }
 0x130   : > { %v758_v42 = vmax.f32 %v742_v38, 0.0  ;;  %v601_v13 = vpop.permute.xlu1 %600 }
 0x131   : > { %v628_v60 = vmul.f32 %v601_v13, %v1643_v49 }
 0x132   : > { %1303 = vrsqrt.f32 %v758_v42  ;;  %vm842_vm7 = vcmp.eq.f32.partialorder %v758_v42, inf  ;;  %v845_v2 = vand.u32 2147483648, %v758_v42  ;;  %vm844_vm8 = vcmp.eq.f32.partialorder %v758_v42, 0.0 }
 0x133   : > { %1305 = vrsqrt.f32 %v759_v50  ;;  %v644_v31 = vadd.f32 %v628_v60, %v544_v53 }
 0x135   : > { %v418_v43 = vpop.permute.xlu1 %417 }
 0x136   : > { %v445_v39 = vadd.f32 %v1638_v46, %v418_v43  ;;  %v852_v46 = vand.u32 2147483648, %v759_v50 }
 0x138   : > { %v1302_v11 = vpop.eup %1301 }
 0x139   : > { %v834_v32 = vmul.f32 %v1302_v11, %v757_v35 }
 0x13a   : > { %v505_v51 = vpop.permute.xlu1 %504 }
 0x13b   : > { %v836_v52 = vsel %vm835_vm5, %v757_v35, %v834_v32  ;;  %v529_v4 = vmul.f32 %v505_v51, %v1640_v47 }
 0x13c   : > { %v1304_v54 = vpop.eup %1303  ;;  %v839_v59 = vsel %vm837_vm6, %v838_v55, %v836_v52 }
 0x13d   : > { %v841_v30 = vmul.f32 %v1304_v54, %v758_v42  ;;  %v885_v63 = vmul.f32 %v839_v59, %v757_v35  ;;  %v1306_v14 = vpop.eup %1305  ;;  %v545_v17 = vadd.f32 %v529_v4, %v445_v39 }
 0x13e   : > { %v509_v29 = vpop.permute.xlu1 %508  ;;  %v848_v26 = vmul.f32 %v1306_v14, %v759_v50 }
 0x13f   : > { %v843_v48 = vsel %vm842_vm7, %v758_v42, %v841_v30  ;;  %v530_v6 = vmul.f32 %v509_v29, %v1640_v47 }
 0x140   : > { %v846_v58 = vsel %vm844_vm8, %v845_v2, %v843_v48  ;;  %v850_v22 = vsel %vm849_vm9, %v759_v50, %v848_v26  ;;  %v299_v2 = vpop.permute.xlu0 %298 }
 0x141   : > { %v886_v0 = vmul.f32 %v846_v58, %v758_v42  ;;  %v546_v12 = vadd.f32 %v530_v6, %v446_v15  ;;  %v853_v40 = vsel %vm851_vm10, %v852_v46, %v850_v22  ;;  %v305_v60 = vmul.f32 %v1640_v47, %v299_v2 }
 0x142   : > { %v887_v25 = vmul.f32 %v853_v40, %v759_v50 }
 0x143   : > { %v701_v61 = vpop.permute.xlu1 %700  ;;  %v1172_v8 = vpack.c.bf16 %v886_v0, %v885_v63  ;;  %v646_v19 = vadd.f32 %v630_v27, %v546_v12 }
 0x144   : > { %v728_v3 = vmul.f32 %v701_v61, %v1650_v56  ;;  %v309_v45 = vpop.permute.xlu0 %308 }
 0x145   : > { %1173 = vmatpush3.bf16.msra.mxu0 %v1172_v8  ;;  %v315_v0 = vmul.f32 %v1643_v49, %v309_v45 }
 0x146   : > { %v744_v62 = vadd.f32 %v728_v3, %v644_v31  ;;  %1174 = vmatprep.subr.bf16.mxu0 %v1397_v18 }
 0x148   : > { %v760_v5 = vmax.f32 %v744_v62, 0.0  ;;  %v605_v36 = vpop.permute.xlu1 %604 }
 0x149   : > { %v629_v9 = vmul.f32 %v605_v36, %v1643_v49 }
 0x14a   : > { %1307 = vrsqrt.f32 %v760_v5  ;;  %vm856_vm11 = vcmp.eq.f32.partialorder %v760_v5, inf  ;;  %v859_v42 = vand.u32 2147483648, %v760_v5  ;;  %vm858_vm12 = vcmp.eq.f32.partialorder %v760_v5, 0.0 }
 0x14b   : > { %v645_v23 = vadd.f32 %v629_v9, %v545_v17 }
 0x14d   : > { %v705_v33 = vpop.permute.xlu1 %704 }
 0x14e   : > { %v729_v57 = vmul.f32 %v705_v33, %v1650_v56 }
 0x150   : > { %v745_v28 = vadd.f32 %v729_v57, %v645_v23 }
 0x151   : > { %v709_v1 = vpop.permute.xlu1 %708 }
 0x152   : > { %v761_v21 = vmax.f32 %v745_v28, 0.0  ;;  %v730_v35 = vmul.f32 %v709_v1, %v1650_v56 }
 0x154   : > { %v1308_v37 = vpop.eup %1307  ;;  %v746_v38 = vadd.f32 %v730_v35, %v646_v19  ;;  %1309 = vrsqrt.f32 %v761_v21  ;;  %vm863_vm13 = vcmp.eq.f32.partialorder %v761_v21, inf  ;;  %v866_v51 = vand.u32 2147483648, %v761_v21 }
 0x155   : > { %v855_v20 = vmul.f32 %v1308_v37, %v760_v5  ;;  %vm865_vm14 = vcmp.eq.f32.partialorder %v761_v21, 0.0 }
 0x156   : > { %v762_v34 = vmax.f32 %v746_v38, 0.0  ;;  %v294_v48 = vpop.permute.xlu1 %293 }
 0x157   : > { %v857_v13 = vsel %vm856_vm11, %v760_v5, %v855_v20  ;;  %v306_v63 = vadd.f32 %v305_v60, %v294_v48 }
 0x158   : > { %v860_v41 = vsel %vm858_vm12, %v859_v42, %v857_v13  ;;  %1311 = vrsqrt.f32 %v762_v34  ;;  %vm870_vm15 = vcmp.eq.f32.partialorder %v762_v34, inf  ;;  %v873_v55 = vand.u32 2147483648, %v762_v34 }
 0x159   : > { %v888_v43 = vmul.f32 %v860_v41, %v760_v5  ;;  %vm872_vm0 = vcmp.eq.f32.partialorder %v762_v34, 0.0  ;;  %v316_v61 = vadd.f32 %v315_v0, %v306_v63 }
 0x15b   : > { %v1175_v24 = vpack.c.bf16 %v888_v43, %v887_v25  ;;  %v319_v58 = vpop.permute.xlu1 %318 }
 0x15c   : > { %v325_v53 = vmul.f32 %v1650_v56, %v319_v58 }
 0x15d   : > { %1176 = vmatpush3.bf16.msra.mxu0 %v1175_v24 }
 0x15e   : > { %v1310_v44 = vpop.eup %1309  ;;  %1177 = vmatprep.subr.bf16.mxu0 %v1397_v18  ;;  %v892_v18 = vld [vmem:[%s1848_s3] sm:$0xff]  ;;  %v326_v8 = vadd.f32 %v325_v53, %v316_v61 }
 0x15f   : > { %v862_v11 = vmul.f32 %v1310_v44, %v761_v21 }
 0x161   : > { %v864_v32 = vsel %vm863_vm13, %v761_v21, %v862_v11 }
 0x162   : > { %v1312_v16 = vpop.eup %1311  ;;  %v867_v54 = vsel %vm865_vm14, %v866_v51, %v864_v32 }
 0x163   : > { %v869_v52 = vmul.f32 %v1312_v16, %v762_v34  ;;  %v889_v50 = vmul.f32 %v867_v54, %v761_v21 }
 0x165   : > { %v871_v7 = vsel %vm870_vm15, %v762_v34, %v869_v52 }
 0x166   : > { %v874_v30 = vsel %vm872_vm0, %v873_v55, %v871_v7 }
 0x167   : > { %v890_v29 = vmul.f32 %v874_v30, %v762_v34 }
 0x169   : > { %v1178_v59 = vpack.c.bf16 %v890_v29, %v889_v50 }
 0x16b   : > { %1179 = vmatpush3.bf16.msra.mxu0 %v1178_v59 }
 0x16e   : > { %1154 = vmatmul.mubr.f32.vlgmr.msra.gmra.mrb[0].mxu0 %v892_v18 }
 0x241   : > { %v959_v31 = vpop.f32.mrb[0].mxu0 }
 0x242   : > { %v963_v3 = vadd.f32 %v959_v31, %v326_v8  ;;  %v1155_v62 = vpop.f32.mrb[1].mxu0 }
 0x244   : > { %969 = vst [vmem:[%s267_s9] sm:$0xff] %v963_v3 }
 0x245   : > { %1326 = shalt.err (!%p1323_p5)
}
 0x246   : > { %s1327_s24 = scalar_lea.hbm %s1798_s13, 128  ;;  %s1331_s29 = scalar_lea.hbm %s1850_s5, 256 }
 0x247   : > { %p1328_p6 = scmp.ne.s32.totalorder %s1798_s13, %s1327_s24  ;;  %p1332_p10 = scmp.lt.u32.totalorder %s1798_s13, %s1850_s5 }
 0x248   : > { %p1333_p11 = scmp.lt.u32.totalorder %s1331_s29, %s1327_s24  ;;  %p1335_p13 = scmp.lt.u32.totalorder %s1327_s24, %s1798_s13 }
 0x249   : > { %p1329_p7 = pnand %p1328_p6, %p1471_p4 }
 0x24a   : > { %p1334_p12 = por %p1333_p11, %p1332_p10 }
 0x24b   : > { %p1330_p9 = pneg %p1329_p7 }
 0x24c   : > { %p1336_p0 = por %p1335_p13, %p1334_p12 }
 0x24e   : > { %p1337_p1 = pnand %p1336_p0, %p1330_p9 }
 0x250   : > { %1340 = shalt.err (!%p1337_p1)
}
 0x251   : > { %1180 = dma.vmem_to_hbm [thread:$0]  (%p1471_p4), %s1800_s10, 128, %s1798_s13, %s971_s14  }
 0x252 PF: > { %p1186_p2 = scmp.ge.s32.totalorder %s1391_s23, 2  ;;  %s996_s9 = sand.u32 1, %s1371_s18  }
 0x253   : > { %s997_s11 = scalar_lea.sflag [#allocation4], %s996_s9 }
 0x254   : > { %p1183_p3 = pnand %p1186_p2, %p1478_p8 }
 0x256   : > { %1366 = dma.done.wait (!%p1183_p3), %s997_s11, 128  }
 0x257   : > { %1368 = vsyncadd (!%p1183_p3), %s997_s11, 4294967168  ;;  %s18_s23 = sadd.s32 1, %s1391_s23   ;;  %s1853_s18 = smov %s1375_s19 }
 0x258   : > { %p15_p5 = scmp.ge.s32.totalorder %s18_s23, 4   ;;  %s1854_s19 = smov %s1379_s20 }
 0x259   : > { %s1855_s20 = smov %s1484_s6  ;;  %s1856_s21 = smov %s1387_s22 }
 0x25a   : > { %s1857_s22 = smov %s1859_s26  ;;  %17 = sbr.rel (!%p15_p5) target bundleno = 4 (0x4), region = 92 }
 0x261   :  { %1002 = vsyncpa [#allocation4], 1 }
 0x262   :  { %1004 = vsyncpa [#allocation4 + $0x1], 1 }

</bundles_post_ra>
